<compile_context>
chip_gen: v7x
topology: tpu7x:2x2x1
jax: 0.10.0
libtpu: 0.0.40
codegen_flags: <defaults>
</compile_context>

<pallas_src>
import functools
import math

import jax
import jax.numpy as jnp
from jax.experimental import pallas as pl
from jax.experimental.pallas import tpu as pltpu

_SMOOTH = 1e-5                 # BinaryDiceLoss.smooth
_DICE_COEFF = (0.1, 0.9)       # DiceLoss.coff
_IGNORE_INDEX = (10000,)       # DiceLoss.ignore_index


def _ce_dice_kernel(logits_ref, tgt_ref, ce_ref, n0_ref, n1_ref, d0_ref, d1_ref,
                    *, n_pix, tile_rows, masked):
    # logits_ref: (1, 2, tile_rows, 128)   tgt_ref: (1, tile_rows, 128) int32
    # ce/n0/n1/d0/d1 refs: (1, 1, 1) f32 accumulators, resident across j.
    j = pl.program_id(1)

    @pl.when(j == 0)
    def _():
        ce_ref[...] = jnp.zeros_like(ce_ref)
        n0_ref[...] = jnp.zeros_like(n0_ref)
        n1_ref[...] = jnp.zeros_like(n1_ref)
        d0_ref[...] = jnp.zeros_like(d0_ref)
        d1_ref[...] = jnp.zeros_like(d1_ref)

    l0 = logits_ref[0, 0].astype(jnp.float32)        # (tile_rows, 128)
    l1 = logits_ref[0, 1].astype(jnp.float32)        # (tile_rows, 128)
    tgt = tgt_ref[0]                                 # (tile_rows, 128) int32

    d = l1 - l0                                      # logit difference

    if masked:
        # Ragged tail: mask by absolute pixel index (derived from program_id,
        # never from data).  Sanitise d BEFORE the transcendentals so garbage
        # from the block overhang / pad can't produce Inf/NaN.
        rows = jax.lax.broadcasted_iota(jnp.int32, (tile_rows, 128), 0)
        lanes = jax.lax.broadcasted_iota(jnp.int32, (tile_rows, 128), 1)
        pix = (j * tile_rows + rows) * 128 + lanes
        valid = pix < n_pix
        validf = valid.astype(jnp.float32)
        d = jnp.where(valid, d, 0.0)
    else:
        validf = None

    is1 = tgt == 1

    # Cross entropy (2 classes):  nll = softplus(d) if t==0 else softplus(-d).
    # Stable form max(s,0) + log(1 + exp(-|d|)) shares one exp with the softmax.
    e = jnp.exp(-jnp.abs(d))                         # in (0, 1]
    log1pe = jnp.log(1.0 + e)
    s = jnp.where(is1, -d, d)
    nll = jnp.maximum(s, 0.0) + log1pe

    # Softmax probabilities via sigmoid(d).  Exact reciprocal: approx=True
    # (~2^-12 rel. error) would not meet the 1e-5 test tolerance.
    r = 1.0 / (1.0 + e)
    p1 = jnp.where(d >= 0, r, e * r)
    p0 = 1.0 - p1

    # DiceLoss quirk: target_clone[target_clone == i] = 1, others keep label.
    tgt_f = tgt.astype(jnp.float32)
    tclone0 = jnp.where(tgt == 0, 1.0, tgt_f)
    tclone1 = jnp.where(is1, 1.0, tgt_f)

    num0 = p0 * tclone0
    num1 = p1 * tclone1
    den0 = p0 * p0 + tclone0 * tclone0
    den1 = p1 * p1 + tclone1 * tclone1

    if masked:
        nll = nll * validf
        num0 = num0 * validf
        num1 = num1 * validf
        den0 = den0 * validf
        den1 = den1 * validf

    ce_ref[...] += jnp.sum(nll)
    n0_ref[...] += jnp.sum(num0)
    n1_ref[...] += jnp.sum(num1)
    d0_ref[...] += jnp.sum(den0)
    d1_ref[...] += jnp.sum(den1)


def ce_dice_loss(predict, target, *, tile_pixels=131072):
    """predict: (N, 2, *spatial) logits, target: (N, *spatial) class ids in {0,1}."""
    n, c = predict.shape[0], predict.shape[1]
    if c != 2:
        # DiceLoss.coff only has 2 entries in the reference module.
        raise ValueError("CE_Dice_Loss (as specified) only supports C == 2 classes")
    n_pix = math.prod(predict.shape[2:])
    if n_pix == 0:
        raise ValueError("empty spatial extent")

    # Repack the pixel axis as (rows, 128) lanes for dense sublane packing.
    r_rows = pl.cdiv(n_pix, 128)
    logits = predict.reshape(n, c, n_pix)
    tgt = target.reshape(n, n_pix)
    if tgt.dtype != jnp.int32:
        tgt = tgt.astype(jnp.int32)
    pad = r_rows * 128 - n_pix
    if pad:
        # TODO(synk): this <=127-element pad still costs a full HBM copy; choose
        # spatial sizes with H*W % 128 == 0 to avoid it entirely.
        logits = jnp.pad(logits, ((0, 0), (0, 0), (0, pad)))
        tgt = jnp.pad(tgt, ((0, 0), (0, pad)))
    logits = logits.reshape(n, c, r_rows, 128)
    tgt = tgt.reshape(n, r_rows, 128)

    # Large tiles: ~131072 px (1024 rows) per grid step by default, ~3 MiB
    # double-buffered — far under the scoped VMEM limit on v5e/v6e/v7x.
    default_rows = max(8, (tile_pixels // 128) // 8 * 8)
    tile_rows = r_rows if r_rows <= default_rows else default_rows
    n_tiles = pl.cdiv(r_rows, tile_rows)
    masked = (n_tiles * tile_rows * 128) != n_pix

    kernel = functools.partial(_ce_dice_kernel, n_pix=n_pix,
                               tile_rows=tile_rows, masked=masked)

    out_sds = jax.ShapeDtypeStruct((n, 1, 1), jnp.float32)
    out_spec = pl.BlockSpec((1, 1, 1), lambda i, j: (i, 0, 0))

    ce_p, n0, n1, d0, d1 = pl.pallas_call(
        kernel,
        grid=(n, n_tiles),
        in_specs=[
            pl.BlockSpec((1, c, tile_rows, 128), lambda i, j: (i, 0, j, 0)),
            pl.BlockSpec((1, tile_rows, 128), lambda i, j: (i, j, 0)),
        ],
        out_specs=(out_spec,) * 5,
        out_shape=(out_sds,) * 5,
        compiler_params=pltpu.CompilerParams(
            # batch axis parallel (v7x megacore); pixel-tile axis is a reduction.
            # TODO(synk): for N==1 on v7x, split the pixel range into 2 outer
            # parallel chunks to use both TensorCores.
            dimension_semantics=("parallel", "arbitrary"),
        ),
    )(logits, tgt)

    # --- tiny O(N*C) finalisation in plain JAX ---
    ce = jnp.sum(ce_p) / (n * n_pix)                                 # global mean NLL

    num = jnp.concatenate([n0[:, :, 0], n1[:, :, 0]], axis=1) + _SMOOTH   # (N, 2)
    den = jnp.concatenate([d0[:, :, 0], d1[:, :, 0]], axis=1) + _SMOOTH   # (N, 2)
    per_class = jnp.mean(1.0 - num / den, axis=0)                    # BinaryDiceLoss 'mean'

    used = [i for i in range(c) if i not in _IGNORE_INDEX]
    coeff = jnp.asarray([_DICE_COEFF[i] for i in used], jnp.float32)
    dice = jnp.mean(per_class[jnp.asarray(used)] * coeff)
    return ce + dice


def _reference(predict, target):
    """Pure-JAX mirror of the PyTorch CE_Dice_Loss forward."""
    n, c = predict.shape[0], predict.shape[1]
    m = math.prod(predict.shape[2:])
    logits = predict.reshape(n, c, m).astype(jnp.float32)
    tgt = target.reshape(n, m).astype(jnp.int32)

    # nn.CrossEntropyLoss(reduction='mean')
    lse = jax.scipy.special.logsumexp(logits, axis=1)                        # (N, M)
    picked = jnp.take_along_axis(logits, tgt[:, None, :], axis=1)[:, 0, :]
    ce = jnp.mean(lse - picked)

    # DiceLoss (with the target_clone quirk and class coefficients)
    probs = jax.nn.softmax(logits, axis=1)
    tgt_f = tgt.astype(jnp.float32)
    losses = []
    for i in range(c):
        if i in _IGNORE_INDEX:
            continue
        tclone = jnp.where(tgt_f == i, 1.0, tgt_f)
        pi = probs[:, i, :]
        num = jnp.sum(pi * tclone, axis=1) + _SMOOTH
        den = jnp.sum(pi * pi + tclone * tclone, axis=1) + _SMOOTH
        losses.append(jnp.mean(1.0 - num / den) * _DICE_COEFF[i])
    dice = jnp.mean(jnp.stack(losses))
    return ce + dice


if __name__ == "__main__":
    key = jax.random.PRNGKey(0)
    k1, k2, k3, k4, k5, k6 = jax.random.split(key, 6)

    n, c = 2, 2

    # 1) 128-aligned spatial size: no pad, no mask, single tile.
    predict = jax.random.normal(k1, (n, c, 16, 16), dtype=jnp.float32)
    target = jax.random.randint(k2, (n, 16, 16), 0, c, dtype=jnp.int32)
    loss = jax.block_until_ready(ce_dice_loss(predict, target))
    ref = _reference(predict, target)
    assert jnp.allclose(loss, ref, atol=1e-5, rtol=1e-5), (loss, ref)

    # 1b) bf16 logits (native dtype at the HBM boundary, upcast in VMEM).
    predict_bf = predict.astype(jnp.bfloat16)
    loss_bf = jax.block_until_ready(ce_dice_loss(predict_bf, target))
    ref_bf = _reference(predict_bf, target)
    assert jnp.allclose(loss_bf, ref_bf, atol=1e-5, rtol=1e-5), (loss_bf, ref_bf)

    # 2) Multi-tile accumulation + masked tail + block overhang past the array
    #    (small tile_pixels override just to exercise the grid path).
    predict2 = jax.random.normal(k3, (n, c, 36, 36), dtype=jnp.float32)
    target2 = jax.random.randint(k4, (n, 36, 36), 0, c, dtype=jnp.int32)
    loss2 = jax.block_until_ready(ce_dice_loss(predict2, target2, tile_pixels=1024))
    ref2 = _reference(predict2, target2)
    assert jnp.allclose(loss2, ref2, atol=1e-5, rtol=1e-5), (loss2, ref2)

    # 3) Ragged (non-128-aligned) spatial size, single masked tile.
    predict3 = jax.random.normal(k5, (n, c, 15, 15), dtype=jnp.float32)
    target3 = jax.random.randint(k6, (n, 15, 15), 0, c, dtype=jnp.int32)
    loss3 = jax.block_until_ready(ce_dice_loss(predict3, target3))
    ref3 = _reference(predict3, target3)
    assert jnp.allclose(loss3, ref3, atol=1e-5, rtol=1e-5), (loss3, ref3)

    print("KERNEL_OK")
</pallas_src>

<mosaic_0001>
module attributes {stable_mosaic.version = 11 : i64} {
  func.func @_ce_dice_kernel(%arg0: i32, %arg1: i32, %arg2: memref<1x2x2x128xf32, #tpu.memory_space<vmem>>, %arg3: memref<1x2x128xi32, #tpu.memory_space<vmem>>, %arg4: memref<1x1x1xf32, #tpu.memory_space<vmem>>, %arg5: memref<1x1x1xf32, #tpu.memory_space<vmem>>, %arg6: memref<1x1x1xf32, #tpu.memory_space<vmem>>, %arg7: memref<1x1x1xf32, #tpu.memory_space<vmem>>, %arg8: memref<1x1x1xf32, #tpu.memory_space<vmem>>) attributes {dimension_semantics = [#tpu.dimension_semantics<parallel>, #tpu.dimension_semantics<arbitrary>], iteration_bounds = array<i64: 2, 1>, scalar_prefetch = 0 : i64, scratch_operands = 0 : i64, tpu.core_type = #tpu.core_type<tc>, window_params = [{transform_indices = @transform_0, window_bounds = array<i64: 1, 2, 2, 128>}, {transform_indices = @transform_1, window_bounds = array<i64: 1, 2, 128>}, {transform_indices = @transform_2, window_bounds = array<i64: 1, 1, 1>}, {transform_indices = @transform_3, window_bounds = array<i64: 1, 1, 1>}, {transform_indices = @transform_4, window_bounds = array<i64: 1, 1, 1>}, {transform_indices = @transform_5, window_bounds = array<i64: 1, 1, 1>}, {transform_indices = @transform_6, window_bounds = array<i64: 1, 1, 1>}]} {
    %c0_i32 = arith.constant 0 : i32
    %0 = arith.cmpi eq, %arg1, %c0_i32 : i32
    %1 = arith.extui %0 : i1 to i32
    %c0_i32_0 = arith.constant 0 : i32
    %2 = arith.cmpi ne, %1, %c0_i32_0 : i32
    scf.if %2 {
      %cst_55 = arith.constant 0.000000e+00 : f32
      %90 = vector.broadcast %cst_55 : f32 to vector<1x1x1xf32>
      %c0_56 = arith.constant 0 : index
      %c0_57 = arith.constant 0 : index
      %c0_58 = arith.constant 0 : index
      %91 = vector.load %arg4[%c0_56, %c0_57, %c0_58] : memref<1x1x1xf32, #tpu.memory_space<vmem>>, vector<1x1x1xf32>
      tpu.vector_store %arg4[%c0_56, %c0_57, %c0_58], %90 {strides = array<i32>} : memref<1x1x1xf32, #tpu.memory_space<vmem>>, vector<1x1x1xf32>,
      %cst_59 = arith.constant 0.000000e+00 : f32
      %92 = vector.broadcast %cst_59 : f32 to vector<1x1x1xf32>
      %c0_60 = arith.constant 0 : index
      %c0_61 = arith.constant 0 : index
      %c0_62 = arith.constant 0 : index
      %93 = vector.load %arg5[%c0_60, %c0_61, %c0_62] : memref<1x1x1xf32, #tpu.memory_space<vmem>>, vector<1x1x1xf32>
      tpu.vector_store %arg5[%c0_60, %c0_61, %c0_62], %92 {strides = array<i32>} : memref<1x1x1xf32, #tpu.memory_space<vmem>>, vector<1x1x1xf32>,
      %cst_63 = arith.constant 0.000000e+00 : f32
      %94 = vector.broadcast %cst_63 : f32 to vector<1x1x1xf32>
      %c0_64 = arith.constant 0 : index
      %c0_65 = arith.constant 0 : index
      %c0_66 = arith.constant 0 : index
      %95 = vector.load %arg6[%c0_64, %c0_65, %c0_66] : memref<1x1x1xf32, #tpu.memory_space<vmem>>, vector<1x1x1xf32>
      tpu.vector_store %arg6[%c0_64, %c0_65, %c0_66], %94 {strides = array<i32>} : memref<1x1x1xf32, #tpu.memory_space<vmem>>, vector<1x1x1xf32>,
      %cst_67 = arith.constant 0.000000e+00 : f32
      %96 = vector.broadcast %cst_67 : f32 to vector<1x1x1xf32>
      %c0_68 = arith.constant 0 : index
      %c0_69 = arith.constant 0 : index
      %c0_70 = arith.constant 0 : index
      %97 = vector.load %arg7[%c0_68, %c0_69, %c0_70] : memref<1x1x1xf32, #tpu.memory_space<vmem>>, vector<1x1x1xf32>
      tpu.vector_store %arg7[%c0_68, %c0_69, %c0_70], %96 {strides = array<i32>} : memref<1x1x1xf32, #tpu.memory_space<vmem>>, vector<1x1x1xf32>,
      %cst_71 = arith.constant 0.000000e+00 : f32
      %98 = vector.broadcast %cst_71 : f32 to vector<1x1x1xf32>
      %c0_72 = arith.constant 0 : index
      %c0_73 = arith.constant 0 : index
      %c0_74 = arith.constant 0 : index
      %99 = vector.load %arg8[%c0_72, %c0_73, %c0_74] : memref<1x1x1xf32, #tpu.memory_space<vmem>>, vector<1x1x1xf32>
      tpu.vector_store %arg8[%c0_72, %c0_73, %c0_74], %98 {strides = array<i32>} : memref<1x1x1xf32, #tpu.memory_space<vmem>>, vector<1x1x1xf32>,
    } else {
    }
    %c0 = arith.constant 0 : index
    %c0_1 = arith.constant 0 : index
    %c0_2 = arith.constant 0 : index
    %c0_3 = arith.constant 0 : index
    %3 = vector.load %arg2[%c0, %c0_1, %c0_2, %c0_3] : memref<1x2x2x128xf32, #tpu.memory_space<vmem>>, vector<1x1x2x128xf32>
    %4 = vector.shape_cast %3 : vector<1x1x2x128xf32> to vector<2x128xf32>
    %c0_4 = arith.constant 0 : index
    %c1 = arith.constant 1 : index
    %c0_5 = arith.constant 0 : index
    %c0_6 = arith.constant 0 : index
    %5 = vector.load %arg2[%c0_4, %c1, %c0_5, %c0_6] : memref<1x2x2x128xf32, #tpu.memory_space<vmem>>, vector<1x1x2x128xf32>
    %6 = vector.shape_cast %5 : vector<1x1x2x128xf32> to vector<2x128xf32>
    %c0_7 = arith.constant 0 : index
    %c0_8 = arith.constant 0 : index
    %c0_9 = arith.constant 0 : index
    %7 = vector.load %arg3[%c0_7, %c0_8, %c0_9] : memref<1x2x128xi32, #tpu.memory_space<vmem>>, vector<1x2x128xi32>
    %8 = vector.shape_cast %7 : vector<1x2x128xi32> to vector<2x128xi32>
    %9 = arith.subf %6, %4 : vector<2x128xf32>
    %c1_i32 = arith.constant 1 : i32
    %10 = vector.broadcast %c1_i32 : i32 to vector<2x128xi32>
    %11 = arith.cmpi eq, %8, %10 : vector<2x128xi32>
    %12 = math.absf %9 : vector<2x128xf32>
    %cst = arith.constant 0.000000e+00 : f32
    %13 = vector.broadcast %cst : f32 to vector<2x128xf32>
    %14 = arith.subf %13, %12 : vector<2x128xf32>
    %15 = math.exp %14 : vector<2x128xf32>
    %cst_10 = arith.constant 1.000000e+00 : f32
    %16 = vector.broadcast %cst_10 : f32 to vector<2x128xf32>
    %17 = arith.addf %16, %15 : vector<2x128xf32>
    %18 = math.log %17 : vector<2x128xf32>
    %cst_11 = arith.constant 0.000000e+00 : f32
    %19 = vector.broadcast %cst_11 : f32 to vector<2x128xf32>
    %20 = arith.subf %19, %9 : vector<2x128xf32>
    %21 = arith.select %11, %20, %9 : vector<2x128xi1>, vector<2x128xf32>
    %cst_12 = arith.constant 0.000000e+00 : f32
    %22 = vector.broadcast %cst_12 : f32 to vector<2x128xf32>
    %23 = arith.maximumf %21, %22 : vector<2x128xf32>
    %24 = arith.addf %23, %18 : vector<2x128xf32>
    %cst_13 = arith.constant 1.000000e+00 : f32
    %25 = vector.broadcast %cst_13 : f32 to vector<2x128xf32>
    %26 = arith.addf %25, %15 : vector<2x128xf32>
    %cst_14 = arith.constant 1.000000e+00 : f32
    %27 = vector.broadcast %cst_14 : f32 to vector<2x128xf32>
    %28 = arith.divf %27, %26 : vector<2x128xf32>
    %cst_15 = arith.constant 0.000000e+00 : f32
    %29 = vector.broadcast %cst_15 : f32 to vector<2x128xf32>
    %30 = arith.cmpf oge, %9, %29 : vector<2x128xf32>
    %31 = arith.mulf %15, %28 : vector<2x128xf32>
    %32 = arith.select %30, %28, %31 : vector<2x128xi1>, vector<2x128xf32>
    %cst_16 = arith.constant 1.000000e+00 : f32
    %33 = vector.broadcast %cst_16 : f32 to vector<2x128xf32>
    %34 = arith.subf %33, %32 : vector<2x128xf32>
    %35 = arith.sitofp %8 : vector<2x128xi32> to vector<2x128xf32>
    %c0_i32_17 = arith.constant 0 : i32
    %36 = vector.broadcast %c0_i32_17 : i32 to vector<2x128xi32>
    %37 = arith.cmpi eq, %8, %36 : vector<2x128xi32>
    %cst_18 = arith.constant 1.000000e+00 : f32
    %38 = vector.broadcast %cst_18 : f32 to vector<2x128xf32>
    %39 = arith.select %37, %38, %35 : vector<2x128xi1>, vector<2x128xf32>
    %cst_19 = arith.constant 1.000000e+00 : f32
    %40 = vector.broadcast %cst_19 : f32 to vector<2x128xf32>
    %41 = arith.select %11, %40, %35 : vector<2x128xi1>, vector<2x128xf32>
    %42 = arith.mulf %34, %39 : vector<2x128xf32>
    %43 = arith.mulf %32, %41 : vector<2x128xf32>
    %44 = arith.mulf %34, %34 : vector<2x128xf32>
    %45 = arith.mulf %39, %39 : vector<2x128xf32>
    %46 = arith.addf %44, %45 : vector<2x128xf32>
    %47 = arith.mulf %32, %32 : vector<2x128xf32>
    %48 = arith.mulf %41, %41 : vector<2x128xf32>
    %49 = arith.addf %47, %48 : vector<2x128xf32>
    %c0_20 = arith.constant 0 : index
    %c0_21 = arith.constant 0 : index
    %c0_22 = arith.constant 0 : index
    %50 = vector.load %arg4[%c0_20, %c0_21, %c0_22] : memref<1x1x1xf32, #tpu.memory_space<vmem>>, vector<1x1x1xf32>
    %51 = vector.shape_cast %24 : vector<2x128xf32> to vector<1x2x128xf32>
    %cst_23 = arith.constant dense<0.000000e+00> : vector<1xf32>
    %52 = vector.multi_reduction <add>, %51, %cst_23 [1, 2] : vector<1x2x128xf32> to vector<1xf32>
    %53 = vector.shape_cast %52 : vector<1xf32> to vector<1x1x1xf32>
    %54 = vector.extract %53[0, 0, 0] : f32 from vector<1x1x1xf32>
    %55 = vector.broadcast %54 : f32 to vector<1x1x1xf32>
    %56 = arith.addf %50, %55 : vector<1x1x1xf32>
    %c0_24 = arith.constant 0 : index
    %c0_25 = arith.constant 0 : index
    %c0_26 = arith.constant 0 : index
    %57 = vector.load %arg4[%c0_24, %c0_25, %c0_26] : memref<1x1x1xf32, #tpu.memory_space<vmem>>, vector<1x1x1xf32>
    tpu.vector_store %arg4[%c0_24, %c0_25, %c0_26], %56 {strides = array<i32>} : memref<1x1x1xf32, #tpu.memory_space<vmem>>, vector<1x1x1xf32>,
    %c0_27 = arith.constant 0 : index
    %c0_28 = arith.constant 0 : index
    %c0_29 = arith.constant 0 : index
    %58 = vector.load %arg5[%c0_27, %c0_28, %c0_29] : memref<1x1x1xf32, #tpu.memory_space<vmem>>, vector<1x1x1xf32>
    %59 = vector.shape_cast %42 : vector<2x128xf32> to vector<1x2x128xf32>
    %cst_30 = arith.constant dense<0.000000e+00> : vector<1xf32>
    %60 = vector.multi_reduction <add>, %59, %cst_30 [1, 2] : vector<1x2x128xf32> to vector<1xf32>
    %61 = vector.shape_cast %60 : vector<1xf32> to vector<1x1x1xf32>
    %62 = vector.extract %61[0, 0, 0] : f32 from vector<1x1x1xf32>
    %63 = vector.broadcast %62 : f32 to vector<1x1x1xf32>
    %64 = arith.addf %58, %63 : vector<1x1x1xf32>
    %c0_31 = arith.constant 0 : index
    %c0_32 = arith.constant 0 : index
    %c0_33 = arith.constant 0 : index
    %65 = vector.load %arg5[%c0_31, %c0_32, %c0_33] : memref<1x1x1xf32, #tpu.memory_space<vmem>>, vector<1x1x1xf32>
    tpu.vector_store %arg5[%c0_31, %c0_32, %c0_33], %64 {strides = array<i32>} : memref<1x1x1xf32, #tpu.memory_space<vmem>>, vector<1x1x1xf32>,
    %c0_34 = arith.constant 0 : index
    %c0_35 = arith.constant 0 : index
    %c0_36 = arith.constant 0 : index
    %66 = vector.load %arg6[%c0_34, %c0_35, %c0_36] : memref<1x1x1xf32, #tpu.memory_space<vmem>>, vector<1x1x1xf32>
    %67 = vector.shape_cast %43 : vector<2x128xf32> to vector<1x2x128xf32>
    %cst_37 = arith.constant dense<0.000000e+00> : vector<1xf32>
    %68 = vector.multi_reduction <add>, %67, %cst_37 [1, 2] : vector<1x2x128xf32> to vector<1xf32>
    %69 = vector.shape_cast %68 : vector<1xf32> to vector<1x1x1xf32>
    %70 = vector.extract %69[0, 0, 0] : f32 from vector<1x1x1xf32>
    %71 = vector.broadcast %70 : f32 to vector<1x1x1xf32>
    %72 = arith.addf %66, %71 : vector<1x1x1xf32>
    %c0_38 = arith.constant 0 : index
    %c0_39 = arith.constant 0 : index
    %c0_40 = arith.constant 0 : index
    %73 = vector.load %arg6[%c0_38, %c0_39, %c0_40] : memref<1x1x1xf32, #tpu.memory_space<vmem>>, vector<1x1x1xf32>
    tpu.vector_store %arg6[%c0_38, %c0_39, %c0_40], %72 {strides = array<i32>} : memref<1x1x1xf32, #tpu.memory_space<vmem>>, vector<1x1x1xf32>,
    %c0_41 = arith.constant 0 : index
    %c0_42 = arith.constant 0 : index
    %c0_43 = arith.constant 0 : index
    %74 = vector.load %arg7[%c0_41, %c0_42, %c0_43] : memref<1x1x1xf32, #tpu.memory_space<vmem>>, vector<1x1x1xf32>
    %75 = vector.shape_cast %46 : vector<2x128xf32> to vector<1x2x128xf32>
    %cst_44 = arith.constant dense<0.000000e+00> : vector<1xf32>
    %76 = vector.multi_reduction <add>, %75, %cst_44 [1, 2] : vector<1x2x128xf32> to vector<1xf32>
    %77 = vector.shape_cast %76 : vector<1xf32> to vector<1x1x1xf32>
    %78 = vector.extract %77[0, 0, 0] : f32 from vector<1x1x1xf32>
    %79 = vector.broadcast %78 : f32 to vector<1x1x1xf32>
    %80 = arith.addf %74, %79 : vector<1x1x1xf32>
    %c0_45 = arith.constant 0 : index
    %c0_46 = arith.constant 0 : index
    %c0_47 = arith.constant 0 : index
    %81 = vector.load %arg7[%c0_45, %c0_46, %c0_47] : memref<1x1x1xf32, #tpu.memory_space<vmem>>, vector<1x1x1xf32>
    tpu.vector_store %arg7[%c0_45, %c0_46, %c0_47], %80 {strides = array<i32>} : memref<1x1x1xf32, #tpu.memory_space<vmem>>, vector<1x1x1xf32>,
    %c0_48 = arith.constant 0 : index
    %c0_49 = arith.constant 0 : index
    %c0_50 = arith.constant 0 : index
    %82 = vector.load %arg8[%c0_48, %c0_49, %c0_50] : memref<1x1x1xf32, #tpu.memory_space<vmem>>, vector<1x1x1xf32>
    %83 = vector.shape_cast %49 : vector<2x128xf32> to vector<1x2x128xf32>
    %cst_51 = arith.constant dense<0.000000e+00> : vector<1xf32>
    %84 = vector.multi_reduction <add>, %83, %cst_51 [1, 2] : vector<1x2x128xf32> to vector<1xf32>
    %85 = vector.shape_cast %84 : vector<1xf32> to vector<1x1x1xf32>
    %86 = vector.extract %85[0, 0, 0] : f32 from vector<1x1x1xf32>
    %87 = vector.broadcast %86 : f32 to vector<1x1x1xf32>
    %88 = arith.addf %82, %87 : vector<1x1x1xf32>
    %c0_52 = arith.constant 0 : index
    %c0_53 = arith.constant 0 : index
    %c0_54 = arith.constant 0 : index
    %89 = vector.load %arg8[%c0_52, %c0_53, %c0_54] : memref<1x1x1xf32, #tpu.memory_space<vmem>>, vector<1x1x1xf32>
    tpu.vector_store %arg8[%c0_52, %c0_53, %c0_54], %88 {strides = array<i32>} : memref<1x1x1xf32, #tpu.memory_space<vmem>>, vector<1x1x1xf32>,
    return
  }
  func.func @transform_0(%arg0: i32, %arg1: i32) -> (i32, i32, i32, i32) {
    %c0_i32 = arith.constant 0 : i32
    %c0_i32_0 = arith.constant 0 : i32
    %c0_i32_1 = arith.constant 0 : i32
    return %arg0, %c0_i32, %arg1, %c0_i32_0 : i32, i32, i32, i32
  }
  func.func @transform_1(%arg0: i32, %arg1: i32) -> (i32, i32, i32) {
    %c0_i32 = arith.constant 0 : i32
    %c0_i32_0 = arith.constant 0 : i32
    return %arg0, %arg1, %c0_i32 : i32, i32, i32
  }
  func.func @transform_2(%arg0: i32, %arg1: i32) -> (i32, i32, i32) {
    %c0_i32 = arith.constant 0 : i32
    %c0_i32_0 = arith.constant 0 : i32
    %c0_i32_1 = arith.constant 0 : i32
    return %arg0, %c0_i32, %c0_i32_0 : i32, i32, i32
  }
  func.func @transform_3(%arg0: i32, %arg1: i32) -> (i32, i32, i32) {
    %c0_i32 = arith.constant 0 : i32
    %c0_i32_0 = arith.constant 0 : i32
    %c0_i32_1 = arith.constant 0 : i32
    return %arg0, %c0_i32, %c0_i32_0 : i32, i32, i32
  }
  func.func @transform_4(%arg0: i32, %arg1: i32) -> (i32, i32, i32) {
    %c0_i32 = arith.constant 0 : i32
    %c0_i32_0 = arith.constant 0 : i32
    %c0_i32_1 = arith.constant 0 : i32
    return %arg0, %c0_i32, %c0_i32_0 : i32, i32, i32
  }
  func.func @transform_5(%arg0: i32, %arg1: i32) -> (i32, i32, i32) {
    %c0_i32 = arith.constant 0 : i32
    %c0_i32_0 = arith.constant 0 : i32
    %c0_i32_1 = arith.constant 0 : i32
    return %arg0, %c0_i32, %c0_i32_0 : i32, i32, i32
  }
  func.func @transform_6(%arg0: i32, %arg1: i32) -> (i32, i32, i32) {
    %c0_i32 = arith.constant 0 : i32
    %c0_i32_0 = arith.constant 0 : i32
    %c0_i32_1 = arith.constant 0 : i32
    return %arg0, %c0_i32, %c0_i32_0 : i32, i32, i32
  }
}

</mosaic_0001>

<bundles_post_ra>
// kernel: tpu_custom_call.1
= control target key start
LH: loop header
LB: loop body
LE: loop exit
PB: predicated region body
PF: predicated region fallthrough
CT: control target
= control target key end

     0   :  { %12 = vsyncpa [#allocation3], 0  ;;  %s1133_s0 = inlined_call_operand.hbm [shape: f32[2,2,2,128], index: 0, kind: input, shape index: {}]   ;;  %s1134_s1 = inlined_call_operand.hbm [shape: s32[2,2,128], index: 1, kind: input, shape index: {}]   ;;  %s1135_s2 = inlined_call_operand.vmem [shape: f32[2,1,1], index: 2, kind: output, shape index: {0}]   ;;  %s1136_s3 = inlined_call_operand.vmem [shape: f32[2,1,1], index: 3, kind: output, shape index: {1}]   ;;  %s1137_s4 = inlined_call_operand.vmem [shape: f32[2,1,1], index: 4, kind: output, shape index: {2}]   ;;  %s1138_s5 = inlined_call_operand.vmem [shape: f32[2,1,1], index: 5, kind: output, shape index: {3}]   ;;  %s1139_s6 = inlined_call_operand.vmem [shape: f32[2,1,1], index: 6, kind: output, shape index: {4}]  }
   0x1   :  { %14 = vsyncpa [#allocation3 + $0x1], 0 }
   0x2   :  { %15 = vsyncpa [#allocation5], 0 }
   0x3   :  { %17 = vsyncpa [#allocation5 + $0x1], 0  ;;  %s917_s21 = smov 0   ;;  %s919_s22 = smov 0  }
   0x4   :  { %s921_s23 = smov 0   ;;  %s923_s24 = smov 0  }
   0x5   :  { %s925_s25 = smov 0   ;;  %s927_s26 = smov 0  }
   0x6 LB: > { %s666_s27 = sadd.s32 4294967295, %s875_s26   ;;  %s35_s28 = sadd.s32 1, %s871_s25  ;;  %s875_s26 = sphi %s927_s26, %s23_s26   ;;  %s871_s25 = sphi %s925_s25, %s1151_s25   ;;  %s867_s24 = sphi %s923_s24, %s1150_s24   ;;  %s863_s23 = sphi %s921_s23, %s1149_s23   ;;  %s859_s22 = sphi %s919_s22, %s1148_s22   ;;  %s855_s21 = sphi %s917_s21, %s1147_s21  }
   0x7   : > { %p37_p0 = scmp.ge.s32.totalorder %s35_s28, 2  ;;  %s44_s29 = sadd.s32 1, %s863_s23 }
   0x8   : > { %p51_p1 = scmp.ne.s32.totalorder %s863_s23, %s859_s22  ;;  %p52_p2 = scmp.eq.s32.totalorder %s875_s26, 0 }
   0x9   : > { %s1153_s28 = smov (%p37_p0, %s35_s28), 0  ;;  %p57_p4 = scmp.ne.s32.totalorder %s859_s22, %s855_s21 }
   0xa   : > { %p953_p3 = por %p52_p2, %p51_p1  ;;  %s39_s7 = ssub.s32 %s871_s25, %s1153_s28 }
   0xb   : > { %p58_p5 = scmp.eq.s32.totalorder %s666_s27, 0  ;;  %p42_p6 = scmp.eq.s32.totalorder %s39_s7, 0 }
   0xc   : > { %p703_p8 = scmp.lt.s32.totalorder %s875_s26, 2  ;;  %s969_s10 = sand.u32 1, %s863_s23  }
   0xd   : > { %p960_p7 = por %p58_p5, %p57_p4  ;;  %s681_s11 = sshll.u32 %s871_s25, 6 }
   0xe   : > { %s966_s9 = scalar_select %p42_p6, %s863_s23, %s44_s29  }
   0xf   : > { %s1142_s8 = scalar_select %p960_p7, 1, 0 }
  0x10   : > { %s670_s12 = sshll.u32 %s969_s10, 2  ;;  %s976_s15 = scalar_lea.hbm %s1133_s0, %s681_s11 }
  0x11   : > { %s243_s16 = scalar_lea.vmem [#allocation2], %s670_s12  ;;  %p980_p9 = pnand %p703_p8, %p953_p3 }
  0x12   : > { %s251_s17 = sshll.u32 %s243_s16, 4  ;;  %s240_s19 = scalar_lea.sflag [#allocation3], %s969_s10  ;;  %s984_s17 = int_to_ptr.vmem [resolvable:$true] %s251_s17 }
  0x13   : > { %s761_s20 = scalar_lea.hbm %s976_s15, 64  ;;  %p763_p11 = pneg %p980_p9 }
  0x14   : > { %p762_p10 = scmp.ne.s32.totalorder %s976_s15, %s761_s20  ;;  %s766_s29 = scalar_lea.hbm %s1133_s0, 128 }
  0x15   : > { %p767_p0 = scmp.lt.u32.totalorder %s976_s15, %s1133_s0  ;;  %p768_p1 = scmp.lt.u32.totalorder %s766_s29, %s761_s20 }
  0x16   : > { %p764_p12 = pnand %p763_p11, %p762_p10  ;;  %p770_p3 = scmp.lt.u32.totalorder %s761_s20, %s976_s15 }
  0x17   : > { %p769_p2 = por %p768_p1, %p767_p0 }
  0x18   : > { %p765_p13 = pneg %p764_p12 }
  0x19   : > { %p771_p4 = por %p770_p3, %p769_p2 }
  0x1b   : > { %p772_p5 = pnand %p771_p4, %p765_p13 }
  0x1d   : > { %775 = shalt.err (!%p772_p5)
}
  0x1e   : > { %s776_s11 = scalar_lea.vmem %s984_s17, 64  ;;  %s877_s12 = smov [#allocation2]  }
  0x1f   : > { %p777_p6 = scmp.ne.s32.totalorder %s984_s17, %s776_s11  ;;  %s781_s13 = sshll.u32 %s877_s12, 4  ;;  %s782_s13 = int_to_ptr.vmem [resolvable:$false] %s781_s13 }
  0x20   : > { %s783_s14 = scalar_lea.vmem %s782_s13, 128  ;;  %p784_p12 = scmp.lt.s32.totalorder %s984_s17, %s782_s13 }
  0x21   : > { %p779_p8 = pnand %p777_p6, %p763_p11  ;;  %p785_p0 = scmp.lt.s32.totalorder %s783_s14, %s776_s11 }
  0x23   : > { %p780_p10 = pneg %p779_p8  ;;  %p786_p1 = por %p785_p0, %p784_p12 }
  0x25   : > { %p787_p2 = pnand %p786_p1, %p780_p10 }
  0x27   : > { %790 = shalt.err (!%p787_p2)
}
  0x28   : > { %s878_s16 = smov 32   ;;  %s879_s20 = smov 2  }
  0x29   : > { %699 = dma.hbm_to_vmem [thread:$0]  (!%p980_p9), %s976_s15, 64, %s984_s17, %s240_s19, %s878_s16, %s878_s16, %s879_s20  }
  0x2a   : > { %p675_p13 = scmp.ge.s32.totalorder %s875_s26, 1  ;;  %p278_p3 = scmp.lt.s32.totalorder %s875_s26, 3 }
  0x2b   : > { %s673_s21 = sshll.u32 %s969_s10, 1  ;;  %s674_s29 = sshll.u32 %s871_s25, 5 }
  0x2c   : > { %p1017_p4 = pnand %p675_p13, %p278_p3  ;;  %s265_s30 = scalar_lea.vmem [#allocation4], %s673_s21 }
  0x2d   : > { %s273_s7 = sshll.u32 %s265_s30, 4  ;;  %s1025_s13 = scalar_lea.hbm %s1134_s1, %s674_s29  ;;  %s274_s7 = int_to_ptr.vmem [resolvable:$true] %s273_s7 }
  0x2e   : > { %s1144_s27 = scalar_select %p1017_p4, 1, 0 }
  0x2f   : > { %s262_s15 = scalar_lea.sflag [#allocation5], %s969_s10  ;;  %s791_s17 = scalar_lea.hbm %s1025_s13, 32 }
  0x30   : > { %p792_p5 = scmp.ne.s32.totalorder %s1025_s13, %s791_s17  ;;  %s796_s16 = scalar_lea.hbm %s1134_s1, 64 }
  0x31   : > { %p797_p10 = scmp.lt.u32.totalorder %s1025_s13, %s1134_s1  ;;  %p798_p12 = scmp.lt.u32.totalorder %s796_s16, %s791_s17 }
  0x32   : > { %p794_p6 = pnand %p792_p5, %p763_p11  ;;  %p800_p1 = scmp.lt.u32.totalorder %s791_s17, %s1025_s13 }
  0x33   : > { %p799_p0 = por %p798_p12, %p797_p10 }
  0x34   : > { %p795_p8 = pneg %p794_p6 }
  0x35   : > { %p801_p2 = por %p800_p1, %p799_p0 }
  0x37   : > { %p802_p13 = pnand %p801_p2, %p795_p8 }
  0x39   : > { %805 = shalt.err (!%p802_p13)
}
  0x3a   : > { %s806_s10 = scalar_lea.vmem %s274_s7, 32  ;;  %s880_s29 = smov [#allocation4]  }
  0x3b   : > { %p807_p3 = scmp.ne.s32.totalorder %s274_s7, %s806_s10  ;;  %s811_s30 = sshll.u32 %s880_s29, 4  ;;  %s812_s30 = int_to_ptr.vmem [resolvable:$false] %s811_s30 }
  0x3c   : > { %s813_s11 = scalar_lea.vmem %s812_s30, 64  ;;  %p814_p7 = scmp.lt.s32.totalorder %s274_s7, %s812_s30 }
  0x3d   : > { %p809_p5 = pnand %p807_p3, %p763_p11  ;;  %p815_p4 = scmp.lt.s32.totalorder %s813_s11, %s806_s10 }
  0x3f   : > { %p810_p6 = pneg %p809_p5  ;;  %p816_p10 = por %p815_p4, %p814_p7 }
  0x41   : > { %p817_p12 = pnand %p816_p10, %p810_p6 }
  0x43   : > { %820 = shalt.err (!%p817_p12)
}
  0x44   : > { %702 = dma.hbm_to_vmem [thread:$0]  (!%p980_p9), %s1025_s13, 32, %s274_s7, %s262_s15  }
  0x45   : > { %p1145_p8 = scmp.ne.s32.totalorder %s1144_s27, 0 }
  0x46   : > { %s284_s12 = sand.u32 (!%p1145_p8), 1, %s859_s22   ;;  %p1146_p11 = scmp.ne.s32.totalorder (!%p1145_p8), %s1142_s8, 0 }
  0x47   : > { %282 = sbr.rel (%p1145_p8) target bundleno = 336 (0x150), region = 28  ;;  %s676_s17 = sshll.u32 (!%p1145_p8), %s284_s12, 2 }
  0x48   : > { %s285_s19 = scalar_lea.sflag (!%p1145_p8), [#allocation3], %s284_s12  ;;  %s288_s14 = scalar_lea.vmem (!%p1145_p8), [#allocation2], %s676_s17 }
  0x4e   : > { %846 = dma.done.wait (%p1146_p11), %s285_s19, 64  }
  0x4f   : > { %848 = vsyncadd (%p1146_p11), %s285_s19, 4294967232  ;;  %s677_s16 = sshll.u32 %s284_s12, 1  ;;  %s294_s20 = scalar_lea.sflag [#allocation5], %s284_s12 }
  0x50   : > { %s297_s18 = scalar_lea.vmem [#allocation4], %s677_s16 }
  0x51   : > { %850 = dma.done.wait (%p1146_p11), %s294_s20, 32  }
  0x52   : > { %852 = vsyncadd (%p1146_p11), %s294_s20, 4294967264  ;;  %v366_v0 = vld [vmem:[%s288_s14] sm:$0x3]  ;;  %v678_v1 = vld [vmem:[%s288_s14 + $0x2] sm:$0x3]  ;;  %vm402_vm3 = vcmask 1041408  }
  0x53   : > { %v370_v2 = vsub.f32 %v678_v1, %v366_v0  ;;  %v369_v8 = vld [vmem:[%s297_s18] sm:$0x3]  ;;  %p341_p7 = scmp.lt.s32.totalorder %s867_s24, 1  ;;  %vm360_vm4 = vcmask 0   ;;  %v881_v35 = vmov 0.0  }
  0x54   : > { %vm371_vm0 = vcmp.eq.s32.totalorder %v369_v8, 1  ;;  %v389_v11 = vcvt.s32.f32 %v369_v8  ;;  %vm390_vm1 = vcmp.eq.s32.totalorder %v369_v8, 0 }
  0x55   : > { %v372_v3 = vand.u32 2147483647, %v370_v2  ;;  %v379_v9 = vsub.f32 0.0, %v370_v2  ;;  %vm385_vm2 = vcmp.ge.f32.partialorder %v370_v2, 0.0  ;;  %s1155_s24 = smov (!%p341_p7, %s867_s24), 1 }
  0x56   : > { %v391_v16 = vsel %vm390_vm1, 1.0, %v389_v11  ;;  %v392_v18 = vsel %vm371_vm0, 1.0, %v389_v11  ;;  %s1068_s7 = scalar_lea.vmem %s1135_s2, %s1155_s24  ;;  %s1075_s21 = scalar_lea.vmem %s1136_s3, %s1155_s24 }
  0x57   : > { %v373_v4 = vsub.f32 0.0, %v372_v3  ;;  %v380_v10 = vsel %vm371_vm0, %v379_v9, %v370_v2  ;;  %v399_v20 = vmul.f32 %v392_v18, %v392_v18  ;;  %v396_v22 = vmul.f32 %v391_v16, %v391_v16  ;;  %361 = vst.msk [vmem:[%s1068_s7] sm:$0x1] %vm360_vm4, %v881_v35  ;;  %s1080_s30 = scalar_lea.vmem %s1137_s4, %s1155_s24  ;;  %362 = vst.msk [vmem:[%s1075_s21] sm:$0x1] %vm360_vm4, %v881_v35  ;;  %s1089_s17 = scalar_lea.vmem %s1138_s5, %s1155_s24 }
  0x58   : > { %v381_v12 = vmax.f32 %v380_v10, 0.0  ;;  %363 = vst.msk [vmem:[%s1080_s30] sm:$0x1] %vm360_vm4, %v881_v35  ;;  %364 = vst.msk [vmem:[%s1089_s17] sm:$0x1] %vm360_vm4, %v881_v35  ;;  %s1096_s16 = scalar_lea.vmem %s1139_s6, %s1155_s24 }
  0x59   : > { %v374_v5 = vmul.f32 1.442695, %v373_v4  ;;  %365 = vst.msk [vmem:[%s1096_s16] sm:$0x1] %vm360_vm4, %v881_v35 }
  0x5b   : > { %755 = vpow2.f32 %v374_v5 }
  0x5e   : > { %v417_v10 = vld [vmem:[%s1075_s21] sm:$0x1] }
  0x5f   : > { %v431_v11 = vld [vmem:[%s1080_s30] sm:$0x1] }
  0x65   : > { %v756_v6 = vpop.eup %755 }
  0x66   : > { %v376_v7 = vadd.f32 1.0, %v756_v6 }
  0x68   : > { %757 = vlog2.f32 %v376_v7 }
  0x69   : > { %759 = vrcp.f32 %v376_v7  ;;  %v401_v7 = vld [vmem:[%s1068_s7] sm:$0x1] }
  0x72   : > { %v758_v13 = vpop.eup %757 }
  0x73   : > { %v760_v14 = vpop.eup %759  ;;  %v378_v15 = vmul.f32 0.6931472, %v758_v13  ;;  %v445_v13 = vld [vmem:[%s1089_s17] sm:$0x1] }
  0x74   : > { %v386_v17 = vmul.f32 %v760_v14, %v756_v6 }
  0x75   : > { %v382_v19 = vadd.f32 %v381_v12, %v378_v15 }
  0x76   : > { %v387_v21 = vsel %vm385_vm2, %v760_v14, %v386_v17 }
  0x77   : > { %v403_v23 = vsel %vm402_vm3, %v382_v19, 0.0  ;;  %v394_v24 = vmul.f32 %v392_v18, %v387_v21  ;;  %v388_v25 = vsub.f32 1.0, %v387_v21  ;;  %v398_v26 = vmul.f32 %v387_v21, %v387_v21  ;;  %v459_v18 = vld [vmem:[%s1096_s16] sm:$0x1] }
  0x78   : > { %404 = vadd.xlane.f32.xlu0 %v403_v23 }
  0x79   : > { %v432_v27 = vsel %vm402_vm3, %v394_v24, 0.0  ;;  %v393_v28 = vmul.f32 %v391_v16, %v388_v25  ;;  %v395_v29 = vmul.f32 %v388_v25, %v388_v25  ;;  %v400_v30 = vadd.f32 %v399_v20, %v398_v26 }
  0x7a   : > { %433 = vadd.xlane.f32.xlu1 %v432_v27 }
  0x7b   : > { %v418_v31 = vsel %vm402_vm3, %v393_v28, 0.0  ;;  %v397_v32 = vadd.f32 %v396_v22, %v395_v29  ;;  %v460_v34 = vsel %vm402_vm3, %v400_v30, 0.0 }
  0x7c   : > { %419 = vadd.xlane.f32.xlu0 %v418_v31 }
  0x7d   : > { %v446_v33 = vsel %vm402_vm3, %v397_v32, 0.0 }
  0x7e   : > { %447 = vadd.xlane.f32.xlu1 %v446_v33 }
  0x80   : > { %461 = vadd.xlane.f32.xlu0 %v460_v34 }
 0x105   : > { %v405_v36 = vpop.xlane.xlu0 %404 }
 0x106   : > { %v406_v37 = vrot.slane %v405_v36, 4 }
 0x107   : > { %v434_v38 = vpop.xlane.xlu1 %433 }
 0x108   : > { %v407_v39 = vadd.f32 %v406_v37, %v405_v36  ;;  %v435_v40 = vrot.slane %v434_v38, 4 }
 0x109   : > { %v420_v41 = vpop.xlane.xlu0 %419 }
 0x10a   : > { %v408_v42 = vrot.slane %v407_v39, 2  ;;  %v436_v43 = vadd.f32 %v435_v40, %v434_v38  ;;  %v421_v44 = vrot.slane %v420_v41, 4 }
 0x10b   : > { %v448_v45 = vpop.xlane.xlu1 %447 }
 0x10c   : > { %v437_v46 = vrot.slane %v436_v43, 2  ;;  %v422_v47 = vadd.f32 %v421_v44, %v420_v41  ;;  %v449_v48 = vrot.slane %v448_v45, 4  ;;  %v409_v49 = vadd.f32 %v408_v42, %v407_v39 }
 0x10d   : > { %v462_v50 = vpop.xlane.xlu0 %461 }
 0x10e   : > { %v423_v51 = vrot.slane %v422_v47, 2  ;;  %v450_v52 = vadd.f32 %v449_v48, %v448_v45  ;;  %v463_v53 = vrot.slane %v462_v50, 4  ;;  %v410_v54 = vrot.slane %v409_v49, 1 }
 0x10f   : > { %v438_v55 = vadd.f32 %v437_v46, %v436_v43 }
 0x110   : > { %v451_v56 = vrot.slane %v450_v52, 2  ;;  %v464_v57 = vadd.f32 %v463_v53, %v462_v50  ;;  %v411_v58 = vadd.f32 %v410_v54, %v409_v49  ;;  %v424_v59 = vadd.f32 %v423_v51, %v422_v47 }
 0x111   : > { %v439_v60 = vrot.slane %v438_v55, 1 }
 0x112   : > { %v452_v61 = vadd.f32 %v451_v56, %v450_v52  ;;  %v465_v62 = vrot.slane %v464_v57, 2  ;;  %682 = vpush %v411_v58  ;;  %v425_v63 = vrot.slane %v424_v59, 1 }
 0x113   : > { %v440_v3 = vadd.f32 %v439_v60, %v438_v55 }
 0x114   : > { %v466_v0 = vadd.f32 %v465_v62, %v464_v57  ;;  %v426_v1 = vadd.f32 %v425_v63, %v424_v59  ;;  %v453_v2 = vrot.slane %v452_v61, 1 }
 0x116   : > { %684 = vpush %v426_v1  ;;  %v454_v4 = vadd.f32 %v453_v2, %v452_v61  ;;  %v467_v5 = vrot.slane %v466_v0, 1 }
 0x117   : > { %686 = vpush %v440_v3 }
 0x118   : > { %688 = vpush %v454_v4  ;;  %v468_v6 = vadd.f32 %v467_v5, %v466_v0 }
 0x11a   : > { %690 = vpush %v468_v6 }
 0x143   : > { %s683_s24 = spop %682 }
 0x144   : > { %v413_v8 = vstv %s683_s24 }
 0x145   : > { %v414_v9 = vadd.f32 %v413_v8, %v401_v7 }
 0x147   : > { %416 = vst.msk [vmem:[%s1068_s7] sm:$0x1] %vm360_vm4, %v414_v9  ;;  %s685_s20 = spop %684 }
 0x148   : > { %v428_v12 = vstv %s685_s20  ;;  %s687_s18 = spop %686 }
 0x149   : > { %v429_v14 = vadd.f32 %v428_v12, %v417_v10  ;;  %v442_v15 = vstv %s687_s18  ;;  %s689_s8 = spop %688 }
 0x14a   : > { %v443_v16 = vadd.f32 %v442_v15, %v431_v11  ;;  %v456_v17 = vstv %s689_s8 }
 0x14b   : > { %430 = vst.msk [vmem:[%s1075_s21] sm:$0x1] %vm360_vm4, %v429_v14  ;;  %v457_v19 = vadd.f32 %v456_v17, %v445_v13  ;;  %s691_s27 = spop %690 }
 0x14c   : > { %444 = vst.msk [vmem:[%s1080_s30] sm:$0x1] %vm360_vm4, %v443_v16  ;;  %v470_v20 = vstv %s691_s27 }
 0x14d   : > { %458 = vst.msk [vmem:[%s1089_s17] sm:$0x1] %vm360_vm4, %v457_v19  ;;  %v471_v21 = vadd.f32 %v470_v20, %v459_v18 }
 0x14f   : > { %472 = vst.msk [vmem:[%s1096_s16] sm:$0x1] %vm360_vm4, %v471_v21 }
 0x150 PF: > { %s23_s26 = sadd.s32 1, %s875_s26   ;;  %s1147_s21 = smov %s859_s22 }
 0x151   : > { %p20_p9 = scmp.ge.s32.totalorder %s23_s26, 4   ;;  %s1148_s22 = smov %s863_s23 }
 0x152   : > { %s1149_s23 = smov %s966_s9  ;;  %s1150_s24 = smov %s871_s25 }
 0x153   : > { %s1151_s25 = smov %s1153_s28  ;;  %22 = sbr.rel (!%p20_p9) target bundleno = 6 (0x6), region = 134 }
 0x15a   :  { %538 = vsyncpa [#allocation3], 1 }
 0x15b   :  { %540 = vsyncpa [#allocation3 + $0x1], 1 }
 0x15c   :  { %541 = vsyncpa [#allocation5], 1 }
 0x15d   :  { %543 = vsyncpa [#allocation5 + $0x1], 1 }

</bundles_post_ra>
